<compile_context>
chip_gen: v7x
topology: tpu7x:2x2x1
jax: 0.10.0
libtpu: 0.0.40
codegen_flags: <defaults>
</compile_context>

<pallas_src>
import functools

import jax
import jax.numpy as jnp
import numpy as np
from jax.experimental import pallas as pl
from jax.experimental.pallas import tpu as pltpu


# ----------------------------------------------------------------------------
# Helpers
# ----------------------------------------------------------------------------
def _mm(a, b, dt=jnp.float32):
    """MXU matmul: operands cast to `dt`, always f32 accumulation."""
    return jnp.dot(a.astype(dt), b.astype(dt), preferred_element_type=jnp.float32)


def _vmem_limit_bytes():
    """Scoped VMEM limit with headroom (v7x has only 64 MiB physical VMEM)."""
    cap = 64 * 1024 * 1024
    try:
        cap = int(pltpu.get_tpu_info().vmem_capacity_bytes)
    except Exception:
        pass
    # >= 16 MiB headroom for compiler-internal scratch / DMA double-buffers.
    return int(max(32 * 1024 * 1024, min(cap - 16 * 1024 * 1024, 100 * 1024 * 1024)))


# ----------------------------------------------------------------------------
# Kernel
# ----------------------------------------------------------------------------
def lsdqn_kernel(hop, mxu_dtype, adj_dtype,
                 x_ref, Wadj_ref, Sm_ref, Sg_ref, inv01_ref,
                 pre_ref, W1_ref,
                 Watt_ref, batt_ref,
                 wrow_ref, qb_ref,
                 q_ref):
    H = W1_ref.shape[-1]
    x = x_ref[...]                        # [N, 1] node cluster label in {0, 1}
    omx = 1.0 - x

    # ---- hop loop: u = relu((W_adj @ u) @ W1[l] + pre[l]) ---------------------
    # u starts at zero, so the aggregation term vanishes exactly for l == 0;
    # linear_0 / linear_2 / linear_3 terms and b1 are pre-folded into pre[l].
    u = jnp.maximum(pre_ref[0], 0.0)

    def hop_body(l, u):
        u_agg = _mm(Wadj_ref[...], u, adj_dtype)     # mean_aggr(edge_attr * u[col], row)
        return jnp.maximum(_mm(u_agg, W1_ref[l], adj_dtype) + pre_ref[l], 0.0)

    if hop <= 4:                          # static unroll for short hop counts
        for l in range(1, hop):
            u = hop_body(l, u)
    else:                                 # deep GNN: keep vreg pressure flat
        u = jax.lax.fori_loop(1, hop, hop_body, u)

    # ---- fused per-cluster mean pooling + gather back to nodes ----------------
    # h_c01 = [global_mean_pool(u*(1-x)) | global_mean_pool(u*x)]        [B, 2H]
    # inv01 (wrapper-hoisted) = [1/mean(1-x) | 1/mean(x)] per graph      [B, 2H]
    h_c01 = _mm(Sm_ref[...], jnp.concatenate([u * omx, u * x], axis=1), mxu_dtype)
    hc01 = _mm(Sg_ref[...], h_c01 * inv01_ref[...], mxu_dtype)          # [N, 2H]
    hc0 = hc01[:, :H]                    # h_c_0[batch]
    hc1 = hc01[:, H:]                    # h_c_1[batch]

    tce = x * hc0 + omx * hc1            # target_cluster_embed

    # ---- attention + 2-way softmax (sigmoid form: one EUP exp + approx vrcp) --
    hcat = jnp.concatenate([u, tce], axis=1)                            # h_a [N, 2H]
    att = _mm(hcat, Watt_ref[...], mxu_dtype) + batt_ref[...]
    w0 = jnp.sum(att * hc0, axis=1, keepdims=True)
    w1 = jnp.sum(att * hc1, axis=1, keepdims=True)
    s1 = pl.reciprocal(1.0 + jnp.exp(w0 - w1), approx=True)             # softmax(.)[:, 1]
    h_s = hc0 + s1 * (hc1 - hc0)

    # ---- folded linear tail: q = [u | tce | h_s] @ w_row^T + bias -------------
    # Single B-transposed MXU pass producing a lane-dense [1, N] slab.
    scat = jnp.concatenate([hcat, h_s], axis=1)                         # [N, 3H]
    q_row = jax.lax.dot_general(wrow_ref[...], scat,
                                dimension_numbers=(((1,), (1,)), ((), ())),
                                preferred_element_type=jnp.float32)     # [1, N]
    q_ref[...] = q_row + qb_ref[...]


# ----------------------------------------------------------------------------
# Wrapper (glue: dense aggregation matrices, hoisted per-hop terms, folded tail)
# ----------------------------------------------------------------------------
def lsdqn_forward_pallas(x, edge_index, edge_attr, batch, params, hop, hidden_dim,
                         num_graphs, compute_dtype=jnp.float32,
                         adj_dtype=jnp.bfloat16):
    x = x.astype(jnp.float32)
    N = x.shape[0]
    H = hidden_dim
    ea = edge_attr.reshape(-1, 1).astype(jnp.float32)          # edge_attr.view(-1, 1)
    row, col = edge_index[0], edge_index[1]

    # --- dense aggregation matrices (one-time glue, outside the hot kernel) ----
    onehot_row = (row[None, :] == jnp.arange(N)[:, None]).astype(jnp.float32)   # [N, E]
    A_mean = onehot_row / jnp.maximum(onehot_row.sum(axis=1, keepdims=True), 1.0)
    P_col = (col[:, None] == jnp.arange(N)[None, :]).astype(jnp.float32) * ea   # [E, N]
    W_adj = A_mean @ P_col                                                      # [N, N] fused

    onehot_b = (batch[None, :] == jnp.arange(num_graphs)[:, None]).astype(jnp.float32)
    S_mean = onehot_b / onehot_b.sum(axis=1, keepdims=True)    # NaN row for an empty graph (matches torch)
    S_gather = onehot_b.T                                      # [N, B]

    # per-(graph, cluster) mean normalizers are u-independent -> hoisted here.
    # inf/NaN for all-one-cluster / empty graphs, matching the torch divide.
    inv0 = 1.0 / (S_mean @ (1.0 - x))                          # [B, 1]
    inv1 = 1.0 / (S_mean @ x)                                  # [B, 1]
    inv01 = jnp.concatenate([jnp.broadcast_to(inv0, (num_graphs, H)),
                             jnp.broadcast_to(inv1, (num_graphs, H))], axis=1)  # [B, 2H]

    # --- hoist all u-independent per-hop terms (b1 folded in) -------------------
    pre, W1t = [], []
    for p in params["layers"]:
        first = x @ p["W0"].T + p["b0"]                        # linear_0(x)
        e_emb = jax.nn.relu(ea @ p["W3"].T + p["b3"])          # relu(linear_3(edge_attr))
        third = (A_mean @ e_emb) @ p["W2"].T + p["b2"]         # linear_2(mean_aggr(.))
        pre.append(first + third + p["b1"][None, :])           # + linear_1 bias folded
        W1t.append(p["W1"].T)
    pre = jnp.stack(pre)                                       # [hop, N, H]
    W1t = jnp.stack(W1t)                                       # [hop, H, H]

    # --- fold the fully linear output tail into one [1, 3H] row + scalar bias ---
    WlS = params["Wlast"][:, :H].T                             # [H, 1]
    WlA = params["Wlast"][:, H:].T                             # [H, 1]
    w_u = params["Wac"][:, :H].T @ WlA                         # action_embed(u)   ∘ last_layer
    w_t = params["Wac"][:, H:].T @ WlA                         # action_embed(tce) ∘ last_layer
    w_s = params["Wsp"].T @ WlS                                # space_embed       ∘ last_layer
    w_row = jnp.concatenate([w_u, w_t, w_s], axis=0).T         # [1, 3H]; order = [u | tce | h_s]
    q_bias = (params["bsp"][None, :] @ WlS
              + params["bac"][None, :] @ WlA
              + params["blast"][None, :])                      # [1, 1]

    WattT = params["Watt"].T                                   # [2H, H] acts on cat([u, tce])
    batt = params["batt"][None, :]                             # [1, H]

    cd, ad = compute_dtype, adj_dtype
    inputs = (x, W_adj.astype(ad), S_mean, S_gather, inv01,
              pre, W1t.astype(ad),
              WattT.astype(cd), batt,
              w_row, q_bias)

    vmem = pltpu.MemorySpace.VMEM
    # TODO(synk): for large N, exploit W_adj's per-graph block-diagonal structure
    # with a grid over graphs (dimension_semantics=("parallel",)) so v7x's two
    # TensorCores are used, VMEM stays bounded, and BlockSpec double-buffering
    # overlaps the next graph's adjacency DMA with this graph's hop loop; at toy
    # N the single fused call is faster.
    # TODO(synk): optionally zero-pad H to 128 in this wrapper for fully unmasked
    # lane-dense vregs throughout (ReLU keeps padded channels at exactly 0).
    q_row = pl.pallas_call(
        functools.partial(lsdqn_kernel, hop, cd, ad),
        out_shape=jax.ShapeDtypeStruct((1, N), jnp.float32),   # lane-dense q slab
        in_specs=[pl.BlockSpec(memory_space=vmem) for _ in inputs],
        out_specs=pl.BlockSpec(memory_space=vmem),
        compiler_params=pltpu.CompilerParams(vmem_limit_bytes=_vmem_limit_bytes()),
    )(*inputs)
    return q_row.reshape(N, 1)


# ----------------------------------------------------------------------------
# Pure-JAX reference (independent formulation via segment ops)
# ----------------------------------------------------------------------------
def lsdqn_reference(x, edge_index, edge_attr, batch, params, hop, hidden_dim, num_graphs):
    N = x.shape[0]
    ea = edge_attr.reshape(-1, 1)
    row, col = edge_index[0], edge_index[1]

    def scatter_mean(vals, idx, size):
        s = jax.ops.segment_sum(vals, idx, num_segments=size)
        c = jax.ops.segment_sum(jnp.ones((vals.shape[0], 1), vals.dtype), idx, num_segments=size)
        return s / jnp.maximum(c, 1.0)

    def global_mean_pool(vals, idx, size):
        s = jax.ops.segment_sum(vals, idx, num_segments=size)
        c = jax.ops.segment_sum(jnp.ones((vals.shape[0], 1), vals.dtype), idx, num_segments=size)
        return s / c

    u = jnp.zeros((N, hidden_dim), jnp.float32)
    for p in params["layers"]:
        first = x @ p["W0"].T + p["b0"]
        u_agg = scatter_mean(ea * u[col], row, N)
        second = u_agg @ p["W1"].T + p["b1"]
        e_emb = jax.nn.relu(ea @ p["W3"].T + p["b3"])
        e_agg = scatter_mean(e_emb, row, N)
        third = e_agg @ p["W2"].T + p["b2"]
        u = jax.nn.relu(first + second + third)

    h_c_0 = global_mean_pool(u * (1 - x), batch, num_graphs) / global_mean_pool(1 - x, batch, num_graphs)
    h_c_1 = global_mean_pool(u * x, batch, num_graphs) / global_mean_pool(x, batch, num_graphs)
    hc0 = h_c_0[batch]
    hc1 = h_c_1[batch]
    tce = x * hc0 + (1 - x) * hc1
    h_a = jnp.concatenate([u, tce], axis=-1)
    att = h_a @ params["Watt"].T + params["batt"]
    w0 = jnp.sum(att * hc0, axis=1, keepdims=True)
    w1 = jnp.sum(att * hc1, axis=1, keepdims=True)
    w = jax.nn.softmax(jnp.concatenate([w0, w1], axis=-1), axis=-1)
    h_s = w[:, 0:1] * hc0 + w[:, 1:2] * hc1
    sp = h_s @ params["Wsp"].T + params["bsp"]
    ac = h_a @ params["Wac"].T + params["bac"]
    return jnp.concatenate([sp, ac], axis=-1) @ params["Wlast"].T + params["blast"]


# ----------------------------------------------------------------------------
# Deterministic parameter init (mirrors nn.Linear shapes)
# ----------------------------------------------------------------------------
def _init_linear(key, in_dim, out_dim):
    kw, kb = jax.random.split(key)
    bound = 1.0 / float(in_dim) ** 0.5
    W = jax.random.uniform(kw, (out_dim, in_dim), jnp.float32, -bound, bound)
    b = jax.random.uniform(kb, (out_dim,), jnp.float32, -bound, bound)
    return W, b


def init_params(key, input_dim, hidden_dim, hop):
    layers = []
    for _ in range(hop):
        key, k0, k1, k2, k3 = jax.random.split(key, 5)
        W0, b0 = _init_linear(k0, input_dim, hidden_dim)
        W1, b1 = _init_linear(k1, hidden_dim, hidden_dim)
        W2, b2 = _init_linear(k2, input_dim, hidden_dim)
        W3, b3 = _init_linear(k3, 1, input_dim)
        layers.append(dict(W0=W0, b0=b0, W1=W1, b1=b1, W2=W2, b2=b2, W3=W3, b3=b3))
    key, ka, ks, kc, kl = jax.random.split(key, 5)
    Watt, batt = _init_linear(ka, 2 * hidden_dim, hidden_dim)
    Wsp, bsp = _init_linear(ks, hidden_dim, hidden_dim)
    Wac, bac = _init_linear(kc, 2 * hidden_dim, hidden_dim)
    Wlast, blast = _init_linear(kl, 2 * hidden_dim, 1)
    return dict(layers=layers, Watt=Watt, batt=batt, Wsp=Wsp, bsp=bsp,
                Wac=Wac, bac=bac, Wlast=Wlast, blast=blast)


# ----------------------------------------------------------------------------
if __name__ == "__main__":
    input_dim, hidden_dim, hop = 1, 32, 2     # x is a per-node 0/1 cluster label
    N, E, B = 16, 32, 2                       # nodes, edges, graphs in the batch

    key = jax.random.PRNGKey(0)
    key, ke, kr, kc = jax.random.split(key, 4)

    # node features: alternating 0/1 so every graph has both clusters (no div-by-zero)
    x = (jnp.arange(N) % 2).astype(jnp.float32).reshape(N, input_dim)
    edge_attr = jax.random.normal(ke, (E,), dtype=jnp.float32)
    row = jax.random.randint(kr, (E,), 0, N)
    col = jax.random.randint(kc, (E,), 0, N)
    edge_index = jnp.stack([row, col]).astype(jnp.int32)
    batch = (jnp.arange(N) // (N // B)).astype(jnp.int32)

    params = init_params(key, input_dim, hidden_dim, hop)

    q_ref = lsdqn_reference(x, edge_index, edge_attr, batch, params, hop, hidden_dim, B)

    # Exact path: f32 adjacency + f32 MXU operands (approx vrcp only in the softmax).
    q = lsdqn_forward_pallas(x, edge_index, edge_attr, batch, params, hop, hidden_dim, B,
                             compute_dtype=jnp.float32, adj_dtype=jnp.float32)
    q = jax.block_until_ready(q)
    np.testing.assert_allclose(np.asarray(q), np.asarray(q_ref), rtol=5e-3, atol=5e-3)

    # Default path: bf16-stored adjacency / W1 (f32 accumulation everywhere).
    q_def = lsdqn_forward_pallas(x, edge_index, edge_attr, batch, params, hop, hidden_dim, B)
    q_def = jax.block_until_ready(q_def)
    np.testing.assert_allclose(np.asarray(q_def), np.asarray(q_ref), rtol=2e-2, atol=2e-2)

    # bf16 MXU-operand path for the pooling/attention tail as well (f32 accumulate).
    q_bf16 = lsdqn_forward_pallas(x, edge_index, edge_attr, batch, params, hop,
                                  hidden_dim, B, compute_dtype=jnp.bfloat16)
    q_bf16 = jax.block_until_ready(q_bf16)
    np.testing.assert_allclose(np.asarray(q_bf16), np.asarray(q_ref), rtol=5e-2, atol=5e-2)

    print("KERNEL_OK")
</pallas_src>

<mosaic_0001>
module attributes {stable_mosaic.version = 11 : i64} {
  func.func @lsdqn_kernel(%arg0: memref<16x1xf32, #tpu.memory_space<vmem>>, %arg1: memref<16x16xf32, #tpu.memory_space<vmem>>, %arg2: memref<2x16xf32, #tpu.memory_space<vmem>>, %arg3: memref<16x2xf32, #tpu.memory_space<vmem>>, %arg4: memref<2x64xf32, #tpu.memory_space<vmem>>, %arg5: memref<2x16x32xf32, #tpu.memory_space<vmem>>, %arg6: memref<2x32x32xf32, #tpu.memory_space<vmem>>, %arg7: memref<64x32xf32, #tpu.memory_space<vmem>>, %arg8: memref<1x32xf32, #tpu.memory_space<vmem>>, %arg9: memref<1x96xf32, #tpu.memory_space<vmem>>, %arg10: memref<1x1xf32, #tpu.memory_space<vmem>>, %arg11: memref<1x16xf32, #tpu.memory_space<vmem>>) attributes {dimension_semantics = [], scalar_prefetch = 0 : i64, scratch_operands = 0 : i64, tpu.core_type = #tpu.core_type<tc>} {
    %c0 = arith.constant 0 : index
    %c0_0 = arith.constant 0 : index
    %0 = vector.load %arg0[%c0, %c0_0] : memref<16x1xf32, #tpu.memory_space<vmem>>, vector<16x1xf32>
    %cst = arith.constant 1.000000e+00 : f32
    %1 = vector.broadcast %cst : f32 to vector<16x1xf32>
    %2 = arith.subf %1, %0 : vector<16x1xf32>
    %c0_1 = arith.constant 0 : index
    %c0_2 = arith.constant 0 : index
    %c0_3 = arith.constant 0 : index
    %3 = vector.load %arg5[%c0_1, %c0_2, %c0_3] : memref<2x16x32xf32, #tpu.memory_space<vmem>>, vector<1x16x32xf32>
    %4 = vector.shape_cast %3 : vector<1x16x32xf32> to vector<16x32xf32>
    %cst_4 = arith.constant 0.000000e+00 : f32
    %5 = vector.broadcast %cst_4 : f32 to vector<16x32xf32>
    %6 = arith.maximumf %4, %5 : vector<16x32xf32>
    %c0_5 = arith.constant 0 : index
    %c0_6 = arith.constant 0 : index
    %7 = vector.load %arg1[%c0_5, %c0_6] : memref<16x16xf32, #tpu.memory_space<vmem>>, vector<16x16xf32>
    %cst_7 = arith.constant dense<0.000000e+00> : vector<16x32xf32>
    %8 = tpu.matmul %7, %6, %cst_7 {dimension_numbers = #tpu.dot_dimension_numbers<[1], [0], [0], [1], [0, 0, 1, 1], [], []>} : vector<16x16xf32>, vector<16x32xf32>, vector<16x32xf32> -> vector<16x32xf32>
    %c1 = arith.constant 1 : index
    %c0_8 = arith.constant 0 : index
    %c0_9 = arith.constant 0 : index
    %9 = vector.load %arg6[%c1, %c0_8, %c0_9] : memref<2x32x32xf32, #tpu.memory_space<vmem>>, vector<1x32x32xf32>
    %10 = vector.shape_cast %9 : vector<1x32x32xf32> to vector<32x32xf32>
    %cst_10 = arith.constant dense<0.000000e+00> : vector<16x32xf32>
    %11 = tpu.matmul %8, %10, %cst_10 {dimension_numbers = #tpu.dot_dimension_numbers<[1], [0], [0], [1], [0, 0, 1, 1], [], []>} : vector<16x32xf32>, vector<32x32xf32>, vector<16x32xf32> -> vector<16x32xf32>
    %c1_11 = arith.constant 1 : index
    %c0_12 = arith.constant 0 : index
    %c0_13 = arith.constant 0 : index
    %12 = vector.load %arg5[%c1_11, %c0_12, %c0_13] : memref<2x16x32xf32, #tpu.memory_space<vmem>>, vector<1x16x32xf32>
    %13 = vector.shape_cast %12 : vector<1x16x32xf32> to vector<16x32xf32>
    %14 = arith.addf %11, %13 : vector<16x32xf32>
    %cst_14 = arith.constant 0.000000e+00 : f32
    %15 = vector.broadcast %cst_14 : f32 to vector<16x32xf32>
    %16 = arith.maximumf %14, %15 : vector<16x32xf32>
    %c0_15 = arith.constant 0 : index
    %c0_16 = arith.constant 0 : index
    %17 = vector.load %arg2[%c0_15, %c0_16] : memref<2x16xf32, #tpu.memory_space<vmem>>, vector<2x16xf32>
    %18 = vector.broadcast %2 : vector<16x1xf32> to vector<16x32xf32>
    %19 = arith.mulf %16, %18 : vector<16x32xf32>
    %20 = vector.broadcast %0 : vector<16x1xf32> to vector<16x32xf32>
    %21 = arith.mulf %16, %20 : vector<16x32xf32>
    %22 = tpu.concatenate %19, %21 in 1 : vector<16x32xf32>, vector<16x32xf32> -> vector<16x64xf32>
    %cst_17 = arith.constant dense<0.000000e+00> : vector<2x64xf32>
    %23 = tpu.matmul %17, %22, %cst_17 {dimension_numbers = #tpu.dot_dimension_numbers<[1], [0], [0], [1], [0, 0, 1, 1], [], []>} : vector<2x16xf32>, vector<16x64xf32>, vector<2x64xf32> -> vector<2x64xf32>
    %c0_18 = arith.constant 0 : index
    %c0_19 = arith.constant 0 : index
    %24 = vector.load %arg3[%c0_18, %c0_19] : memref<16x2xf32, #tpu.memory_space<vmem>>, vector<16x2xf32>
    %c0_20 = arith.constant 0 : index
    %c0_21 = arith.constant 0 : index
    %25 = vector.load %arg4[%c0_20, %c0_21] : memref<2x64xf32, #tpu.memory_space<vmem>>, vector<2x64xf32>
    %26 = arith.mulf %23, %25 : vector<2x64xf32>
    %cst_22 = arith.constant dense<0.000000e+00> : vector<16x64xf32>
    %27 = tpu.matmul %24, %26, %cst_22 {dimension_numbers = #tpu.dot_dimension_numbers<[1], [0], [0], [1], [0, 0, 1, 1], [], []>} : vector<16x2xf32>, vector<2x64xf32>, vector<16x64xf32> -> vector<16x64xf32>
    %28 = vector.extract_strided_slice %27 {offsets = [0, 0], sizes = [16, 32], strides = [1, 1]} : vector<16x64xf32> to vector<16x32xf32>
    %29 = vector.extract_strided_slice %27 {offsets = [0, 32], sizes = [16, 32], strides = [1, 1]} : vector<16x64xf32> to vector<16x32xf32>
    %30 = vector.broadcast %0 : vector<16x1xf32> to vector<16x32xf32>
    %31 = arith.mulf %30, %28 : vector<16x32xf32>
    %32 = vector.broadcast %2 : vector<16x1xf32> to vector<16x32xf32>
    %33 = arith.mulf %32, %29 : vector<16x32xf32>
    %34 = arith.addf %31, %33 : vector<16x32xf32>
    %35 = tpu.concatenate %16, %34 in 1 : vector<16x32xf32>, vector<16x32xf32> -> vector<16x64xf32>
    %c0_23 = arith.constant 0 : index
    %c0_24 = arith.constant 0 : index
    %36 = vector.load %arg7[%c0_23, %c0_24] : memref<64x32xf32, #tpu.memory_space<vmem>>, vector<64x32xf32>
    %cst_25 = arith.constant dense<0.000000e+00> : vector<16x32xf32>
    %37 = tpu.matmul %35, %36, %cst_25 {dimension_numbers = #tpu.dot_dimension_numbers<[1], [0], [0], [1], [0, 0, 1, 1], [], []>} : vector<16x64xf32>, vector<64x32xf32>, vector<16x32xf32> -> vector<16x32xf32>
    %c0_26 = arith.constant 0 : index
    %c0_27 = arith.constant 0 : index
    %38 = vector.load %arg8[%c0_26, %c0_27] : memref<1x32xf32, #tpu.memory_space<vmem>>, vector<1x32xf32>
    %39 = vector.broadcast %38 : vector<1x32xf32> to vector<16x32xf32>
    %40 = arith.addf %37, %39 : vector<16x32xf32>
    %41 = arith.mulf %40, %28 : vector<16x32xf32>
    %cst_28 = arith.constant dense<0.000000e+00> : vector<16xf32>
    %42 = vector.multi_reduction <add>, %41, %cst_28 [1] : vector<16x32xf32> to vector<16xf32>
    %43 = vector.shape_cast %42 : vector<16xf32> to vector<16x1xf32>
    %44 = arith.mulf %40, %29 : vector<16x32xf32>
    %cst_29 = arith.constant dense<0.000000e+00> : vector<16xf32>
    %45 = vector.multi_reduction <add>, %44, %cst_29 [1] : vector<16x32xf32> to vector<16xf32>
    %46 = vector.shape_cast %45 : vector<16xf32> to vector<16x1xf32>
    %47 = arith.subf %43, %46 : vector<16x1xf32>
    %48 = math.exp %47 : vector<16x1xf32>
    %cst_30 = arith.constant 1.000000e+00 : f32
    %49 = vector.broadcast %cst_30 : f32 to vector<16x1xf32>
    %50 = arith.addf %49, %48 : vector<16x1xf32>
    %51 = tpu.reciprocal %50 {approx = true} : vector<16x1xf32> -> vector<16x1xf32>
    %52 = arith.subf %29, %28 : vector<16x32xf32>
    %53 = vector.broadcast %51 : vector<16x1xf32> to vector<16x32xf32>
    %54 = arith.mulf %53, %52 : vector<16x32xf32>
    %55 = arith.addf %28, %54 : vector<16x32xf32>
    %56 = tpu.concatenate %35, %55 in 1 : vector<16x64xf32>, vector<16x32xf32> -> vector<16x96xf32>
    %c0_31 = arith.constant 0 : index
    %c0_32 = arith.constant 0 : index
    %57 = vector.load %arg9[%c0_31, %c0_32] : memref<1x96xf32, #tpu.memory_space<vmem>>, vector<1x96xf32>
    %cst_33 = arith.constant dense<0.000000e+00> : vector<1x16xf32>
    %58 = tpu.matmul %57, %56, %cst_33 {dimension_numbers = #tpu.dot_dimension_numbers<[1], [1], [0], [0], [0, 0, 1, 0], [], []>} : vector<1x96xf32>, vector<16x96xf32>, vector<1x16xf32> -> vector<1x16xf32>
    %c0_34 = arith.constant 0 : index
    %c0_35 = arith.constant 0 : index
    %59 = vector.load %arg10[%c0_34, %c0_35] : memref<1x1xf32, #tpu.memory_space<vmem>>, vector<1x1xf32>
    %60 = vector.broadcast %59 : vector<1x1xf32> to vector<1x16xf32>
    %61 = arith.addf %58, %60 : vector<1x16xf32>
    %c0_36 = arith.constant 0 : index
    %c0_37 = arith.constant 0 : index
    %62 = vector.load %arg11[%c0_36, %c0_37] : memref<1x16xf32, #tpu.memory_space<vmem>>, vector<1x16xf32>
    tpu.vector_store %arg11[%c0_36, %c0_37], %61 {strides = array<i32>} : memref<1x16xf32, #tpu.memory_space<vmem>>, vector<1x16xf32>,
    return
  }
}

</mosaic_0001>

<bundles_post_ra>
// kernel: tpu_custom_call.1
= control target key start
LH: loop header
LB: loop body
LE: loop exit
PB: predicated region body
PF: predicated region fallthrough
CT: control target
= control target key end

     0   :  { %s1138_s0 = inlined_call_operand.vmem [shape: f32[16,1], index: 0, kind: input, shape index: {}]   ;;  %s1139_s1 = inlined_call_operand.vmem [shape: f32[16,16], index: 1, kind: input, shape index: {}]   ;;  %s1140_s2 = inlined_call_operand.vmem [shape: f32[2,16], index: 2, kind: input, shape index: {}]   ;;  %s1141_s3 = inlined_call_operand.vmem [shape: f32[16,2], index: 3, kind: input, shape index: {}]   ;;  %s1142_s4 = inlined_call_operand.vmem [shape: f32[2,64], index: 4, kind: input, shape index: {}]   ;;  %s1143_s5 = inlined_call_operand.vmem [shape: f32[2,16,32], index: 5, kind: input, shape index: {}]   ;;  %s1144_s6 = inlined_call_operand.vmem [shape: f32[2,32,32], index: 6, kind: input, shape index: {}]   ;;  %s1145_s7 = inlined_call_operand.vmem [shape: f32[64,32], index: 7, kind: input, shape index: {}]   ;;  %s1146_s8 = inlined_call_operand.vmem [shape: f32[1,32], index: 8, kind: input, shape index: {}]   ;;  %s1147_s9 = inlined_call_operand.vmem [shape: f32[1,96], index: 9, kind: input, shape index: {}]   ;;  %s1148_s10 = inlined_call_operand.<no memory space> [shape: f32[1,1], index: 10, kind: input, shape index: {}]   ;;  %s1149_s11 = inlined_call_operand.hbm [shape: f32[1,16], index: 11, kind: output, shape index: {}]  }
   0x1   :  { %v16_v0 = vstv %s1148_s10 }
   0x2   :  { %17 = vst [vmem:[#allocation2] sm:$0x1] %v16_v0 }
   0x3   :  { %v45_v1 = vld [vmem:[%s1143_s5] sm:$0xff]  ;;  %v46_v2 = vld [vmem:[%s1143_s5 + $0x8] sm:$0xff]  ;;  %vm51_vm0 = vcmask 130048   ;;  %v719_v9 = vld [vmem:[%s1144_s6 + $0x30] sm:$0xff] }
   0x4   :  { %v49_v3 = vld [vmem:[%s1139_s1] sm:$0xff]  ;;  %v47_v4 = vmax.f32 %v45_v1, 0.0  ;;  %v48_v5 = vmax.f32 %v46_v2, 0.0  ;;  %v718_v7 = vld [vmem:[%s1144_s6 + $0x28] sm:$0xff]  ;;  %v720_v10 = vld [vmem:[%s1144_s6 + $0x38] sm:$0xff] }
   0x5   :  { %768 = vmatprep.mubr.msk.f32.mxu0 %vm51_vm0, %v49_v3  ;;  %v717_v6 = vld [vmem:[%s1144_s6 + $0x20] sm:$0xff] }
   0x6   :  { %v824_v8 = vpack.c.bf16 %v718_v7, %v717_v6 }
   0x7   :  { %18 = vsyncpa [#allocation4], 0  ;;  %v820_v11 = vpack.c.bf16 %v48_v5, %v47_v4  ;;  %v828_v12 = vpack.c.bf16 %v720_v10, %v719_v9  ;;  %v50_v13 = vld [vmem:[%s1139_s1 + $0x8] sm:$0xff]  ;;  %v41_v14 = vld [vmem:[%s1138_s0] sm:$0xff]  ;;  %v907_v16 = vmov 0   ;;  %vm141_vm1 = vcmask 261120  }
   0x8   :  { %825 = vmatprep.subr.bf16.mxu1 %v824_v8  ;;  %v42_v15 = vld [vmem:[%s1138_s0 + $0x8] sm:$0xff]  ;;  %863 = vset.pattern.permute.xlu0 %v907_v16  ;;  %v43_v17 = vsub.f32 1.0, %v41_v14  ;;  %v722_v22 = vld [vmem:[%s1143_s5 + $0x18] sm:$0xff]  ;;  %v721_v23 = vld [vmem:[%s1143_s5 + $0x10] sm:$0xff]  ;;  %v908_v27 = vmov 0.0|0.0   ;;  %vm909_vm2 = vmmov 0  }
   0x9   :  { %821 = vmatprep.subr.bf16.mxu0 %v820_v11  ;;  %827 = vmatpush3.bf16.msra.mxu1 %v824_v8  ;;  %v44_v18 = vsub.f32 1.0, %v42_v15  ;;  %v910_v30 = vmov 0.0   ;;  %s911_s5 = smov 32   ;;  %v225_v46 = vld [vmem:[%s1140_s2] sm:$0x3]  ;;  %vm337_vm3 = vcmask 15360  }
   0xa   :  { %823 = vmatpush3.bf16.msra.mxu0 %v820_v11  ;;  %829 = vmatprep.subr.bf16.mxu1 %v828_v12  ;;  %v333_v47 = vld [vmem:[%s1141_s3] sm:$0xff]  ;;  %vm344_vm4 = vcmask 1041408   ;;  %v334_v52 = vld [vmem:[%s1141_s3 + $0x8] sm:$0xff]  ;;  %v449_v55 = vld [vmem:[%s1145_s7 + $0x10] sm:$0xff]  ;;  %s912_s6 = smov 96   ;;  %vm462_vm5 = vcmask 523264  }
   0xb   :  { %864 = vset.pattern.permute.xlu1 %v907_v16  ;;  %240 = vperm.xlu0 %863, %v41_v14   ;;  %v335_v48 = vld [vmem:[%s1142_s4] sm:$0x3]  ;;  %v448_v54 = vld [vmem:[%s1145_s7 + $0x8] sm:$0xff]  ;;  %v450_v57 = vld [vmem:[%s1145_s7 + $0x18] sm:$0xff]  ;;  %vm619_vm6 = vcmask 785408   ;;  %s914_s21 = smov [#allocation3]  }
   0xc   :  { %228 = vperm.xlu1 %864, %v43_v17   ;;  %832 = vmatprep.subr.bf16.mxu0 %v908_v27  ;;  %v447_v53 = vld [vmem:[%s1145_s7] sm:$0xff]  ;;  %v839_v58 = vpack.c.bf16 %v450_v57, %v449_v55  ;;  %v452_v60 = vld [vmem:[%s1145_s7 + $0x28] sm:$0xff]  ;;  %v453_v2 = vld [vmem:[%s1145_s7 + $0x30] sm:$0xff]  ;;  %s707_s22 = sshll.u32 %s914_s21, 4  ;;  %vm699_vm8 = vcmask 122880   ;;  %s708_s22 = int_to_ptr.vmem [resolvable:$true] %s707_s22 }
   0xd   :  { %769 = vmatmul.mubr.msk.f32.vlgmr.msra.gmra.mrb[0].mxu0 %vm51_vm0, %v50_v13  ;;  %831 = vmatpush3.bf16.msra.mxu1 %v828_v12  ;;  %v835_v56 = vpack.c.bf16 %v448_v54, %v447_v53  ;;  %v451_v59 = vld [vmem:[%s1145_s7 + $0x20] sm:$0xff]  ;;  %v454_v3 = vld [vmem:[%s1145_s7 + $0x38] sm:$0xff]  ;;  %vm853_vm7 = vmpackc.low %vm619_vm6, %vm619_vm6  ;;  %s883_s23 = scalar_lea.vmem %s708_s22, 16  ;;  %s887_s24 = scalar_lea.vmem %s708_s22, 32 }
   0xe   :  { %786 = vmatprep.mubr.msk.f32.mxu0 %vm909_vm2, %v910_v30  ;;  %v843_v1 = vpack.c.bf16 %v452_v60, %v451_v59  ;;  %v847_v4 = vpack.c.bf16 %v454_v3, %v453_v2  ;;  %p884_p0 = scmp.ne.s32.totalorder %s708_s22, %s883_s23  ;;  %p888_p1 = scmp.lt.s32.totalorder %s708_s22, %s708_s22 }
   0xf   :  { %245 = vperm.xlu0 %863, %v42_v15   ;;  %836 = vmatprep.subr.bf16.mxu1 %v835_v56  ;;  %v729_v15 = vld [vmem:[%s1146_s8] ss:$0 sm:$0xff]  ;;  %s913_s8 = smov 64   ;;  %p889_p2 = scmp.lt.s32.totalorder %s887_s24, %s883_s23 }
  0x10   :  { %233 = vperm.xlu1 %864, %v44_v18  }
  0x11   :  { %p890_p3 = por %p889_p2, %p888_p1 }
  0x13   :  { %p891_p4 = pnand %p890_p3, %p884_p0 }
  0x8a   :  { %v1012_v21 = vpop.permute.xlu0 %240 }
  0x8b   :  { %v229_v36 = vpop.permute.xlu1 %228 }
  0x8e   :  { %v246_v32 = vpop.permute.xlu0 %245 }
  0x8f   :  { %v234_v37 = vpop.permute.xlu1 %233 }
  0xe0   :  { %v770_v19 = vpop.f32.mrb[0].mxu0 }
  0xe1   :  { %v124_v20 = vpop.f32.mrb[1].mxu0 }
  0xe2   :  { %779 = vmatprep.mubr.msk.f32.mxu1 %vm141_vm1, %v124_v20 }
  0xe3   :  { %780 = vmatmul.mubr.msk.f32.vlgmr.msra.gmra.mrb[0].mxu1 %vm141_vm1, %v770_v19 }
  0xe4   :  { %838 = vmatpush3.bf16.msra.mxu1 %v835_v56 }
  0xe5   :  { %840 = vmatprep.subr.bf16.mxu1 %v839_v58 }
  0xe8   :  { %842 = vmatpush3.bf16.msra.mxu1 %v839_v58 }
  0xe9   :  { %844 = vmatprep.subr.bf16.mxu1 %v843_v1 }
  0xec   :  { %846 = vmatpush3.bf16.msra.mxu1 %v843_v1 }
  0xed   :  { %848 = vmatprep.subr.bf16.mxu1 %v847_v4 }
  0xf0   :  { %850 = vmatpush3.bf16.msra.mxu1 %v847_v4 }
 0x1b6   :  { %v781_v24 = vpop.f32.mrb[0].mxu1 }
 0x1b7   :  { %v220_v25 = vadd.f32 %v781_v24, %v722_v22  ;;  %v214_v26 = vpop.f32.mrb[1].mxu1 }
 0x1b8   :  { %v215_v28 = vadd.f32 %v721_v23, %v214_v26 }
 0x1b9   :  { %v1020_v29 = vmax.f32 %v220_v25, 0.0 }
 0x1ba   :  { %v1023_v31 = vmax.f32 %v215_v28, 0.0 }
 0x1bb   :  { %v249_v33 = vmul.f32 %v246_v32, %v1020_v29  ;;  %v237_v40 = vmul.f32 %v234_v37, %v1020_v29 }
 0x1bc   :  { %v248_v34 = vmul.f32 %v1012_v21, %v1023_v31  ;;  %v236_v39 = vmul.f32 %v229_v36, %v1023_v31 }
 0x1be   :  { %v865_v35 = vpack.i.bf16 %v249_v33, %v248_v34 }
 0x1c0   :  { %866 = vrot.lane.b32.xlu0 %v865_v35, %s911_s5 }
 0x232   :  { %v867_v38 = vpop.permute.xlu0 %866 }
 0x233   :  { %v869_v41 = vunpack.i.h.bf16 %v867_v38  ;;  %v868_v42 = vunpack.i.l.bf16 %v867_v38 }
 0x235   :  { %v258_v43 = vsel %vm141_vm1, %v236_v39, %v868_v42  ;;  %v259_v44 = vsel %vm141_vm1, %v237_v40, %v869_v41 }
 0x236   :  { %v833_v45 = vpack.c.bf16 %v259_v44, %v258_v43 }
 0x238   :  { %834 = vmatpush3.bf16.msra.mxu0 %v833_v45 }
 0x23b   :  { %787 = vmatmul.mubr.msk.f32.vlgmr.msra.gmra.mrb[2].mxu0 %vm51_vm0, %v225_v46 }
 0x23c   :  { %791 = vmatprep.mubr.msk.f32.mxu0 %vm337_vm3, %v333_v47 }
 0x30e   :  { %v329_v49 = vpop.f32.mrb[2].mxu0 }
 0x30f   :  { %v336_v50 = vmul.f32 %v335_v48, %v329_v49  ;;  %v788_v51 = vpop.f32.mrb[3].mxu0 }
 0x311   :  { %789 = vmatprep.subr.msk.mxu0 %vm344_vm4, %v336_v50 }
 0x312   :  { %790 = vmatpush3.msk.msra.mxu0 %vm344_vm4, %v336_v50  ;;  %v609_v50 = vld [vmem:[#allocation2] sm:$0x1] }
 0x313   :  { %792 = vmatmul.mubr.msk.f32.vlgmr.msra.gmra.mrb[4].mxu0 %vm337_vm3, %v334_v52  ;;  %851 = vmatprep.subr.bf16.mxu0 %v908_v27 }
 0x314   :  { %817 = vmatprep.mubr.msk.f32.mxu0 %vm909_vm2, %v910_v30 }
 0x3e6   :  { %v1065_v61 = vpop.f32.mrb[4].mxu0 }
 0x3e7   :  { %v1067_v62 = vpop.f32.mrb[5].mxu0  ;;  %v426_v63 = vmul.f32 %v1065_v61, %v234_v37  ;;  %v424_v5 = vmul.f32 %v1065_v61, %v246_v32 }
 0x3e8   :  { %v425_v0 = vmul.f32 %v1067_v62, %v229_v36  ;;  %v423_v7 = vmul.f32 %v1067_v62, %v1012_v21 }
 0x3e9   :  { %431 = vrot.lane.b32.xlu0 %v426_v63, %s912_s6 }
 0x3ea   :  { %429 = vrot.lane.b32.xlu1 %v425_v0, %s912_s6 }
 0x45b   :  { %v432_v6 = vpop.permute.xlu0 %431 }
 0x45c   :  { %v436_v8 = vadd.f32 %v432_v6, %v424_v5  ;;  %v430_v9 = vpop.permute.xlu1 %429 }
 0x45d   :  { %v435_v10 = vadd.f32 %v430_v9, %v423_v7 }
 0x45e   :  { %441 = vrot.lane.b32.xlu0 %v436_v8, %s911_s5 }
 0x45f   :  { %439 = vrot.lane.b32.xlu1 %v435_v10, %s911_s5 }
 0x462   :  { %556 = vrot.lane.b32.xlu0 %v1065_v61, %s912_s6 }
 0x463   :  { %554 = vrot.lane.b32.xlu1 %v1067_v62, %s912_s6 }
 0x4d0   :  { %v442_v11 = vpop.permute.xlu0 %441 }
 0x4d1   :  { %v440_v12 = vpop.permute.xlu1 %439  ;;  %v1094_v14 = vsel %vm141_vm1, %v1020_v29, %v442_v11 }
 0x4d2   :  { %v1090_v13 = vsel %vm141_vm1, %v1023_v31, %v440_v12 }
 0x4d3   :  { %810 = vmatprep.mubr.msk.f32.mxu1 %vm462_vm5, %v1090_v13 }
 0x4d4   :  { %811 = vmatmul.mubr.msk.f32.vlgmr.msra.gmra.mrb[2].mxu1 %vm462_vm5, %v1094_v14  ;;  %v557_v23 = vpop.permute.xlu0 %556 }
 0x4d5   :  { %v555_v21 = vpop.permute.xlu1 %554 }
 0x5a7   :  { %v812_v16 = vpop.f32.mrb[2].mxu1 }
 0x5a8   :  { %v541_v17 = vadd.f32 %v812_v16, %v729_v15  ;;  %v535_v18 = vpop.f32.mrb[3].mxu1 }
 0x5a9   :  { %v536_v19 = vadd.f32 %v729_v15, %v535_v18 }
 0x5aa   :  { %v545_v20 = vmul.f32 %v1065_v61, %v541_v17  ;;  %v561_v27 = vmul.f32 %v557_v23, %v541_v17 }
 0x5ab   :  { %v544_v22 = vmul.f32 %v536_v19, %v1067_v62  ;;  %v560_v25 = vmul.f32 %v555_v21, %v536_v19 }
 0x5ac   :  { %v549_v24 = vsel %vm141_vm1, %v545_v20, 0.0  ;;  %v565_v29 = vsel %vm141_vm1, %v561_v27, 0.0 }
 0x5ad   :  { %550 = vadd.xlane.f32.xlu0 %v549_v24  ;;  %v546_v26 = vsel %vm141_vm1, %v544_v22, 0.0  ;;  %v562_v28 = vsel %vm141_vm1, %v560_v25, 0.0 }
 0x5ae   :  { %547 = vadd.xlane.f32.xlu1 %v546_v26 }
 0x5b1   :  { %563 = vadd.xlane.f32.xlu0 %v562_v28 }
 0x5b2   :  { %566 = vadd.xlane.f32.xlu1 %v565_v29 }
 0x5c3   :  { %580 = vrot.lane.b32.xlu1 %v1065_v61, %s911_s5 }
 0x5c7   :  { %578 = vrot.lane.b32.xlu0 %v1067_v62, %s911_s5 }
 0x63a   :  { %v551_v30 = vpop.xlane.xlu0 %550 }
 0x63b   :  { %v548_v31 = vpop.xlane.xlu1 %547 }
 0x63e   :  { %v564_v32 = vpop.xlane.xlu0 %563 }
 0x63f   :  { %v568_v33 = vsub.f32 %v548_v31, %v564_v32  ;;  %v567_v34 = vpop.xlane.xlu1 %566 }
 0x640   :  { %v569_v35 = vsub.f32 %v551_v30, %v567_v34 }
 0x641   :  { %v570_v36 = vmul.f32 1.442695, %v568_v33 }
 0x642   :  { %v572_v37 = vmul.f32 1.442695, %v569_v35  ;;  %v579_v42 = vpop.permute.xlu0 %578 }
 0x643   :  { %875 = vpow2.f32 %v570_v36  ;;  %v581_v43 = vpop.permute.xlu1 %580  ;;  %v584_v44 = vsub.f32 %v1067_v62, %v579_v42 }
 0x644   :  { %877 = vpow2.f32 %v572_v37  ;;  %v585_v46 = vsub.f32 %v1065_v61, %v581_v43 }
 0x64d   :  { %v876_v38 = vpop.eup %875 }
 0x64e   :  { %v878_v39 = vpop.eup %877  ;;  %v574_v40 = vadd.f32 1.0, %v876_v38 }
 0x64f   :  { %v575_v41 = vadd.f32 1.0, %v878_v39 }
 0x650   :  { %879 = vrcp.f32 %v574_v40 }
 0x651   :  { %881 = vrcp.f32 %v575_v41 }
 0x65a   :  { %v880_v45 = vpop.eup %879 }
 0x65b   :  { %v882_v47 = vpop.eup %881  ;;  %v586_v48 = vmul.f32 %v880_v45, %v584_v44 }
 0x65c   :  { %v587_v49 = vmul.f32 %v882_v47, %v585_v46 }
 0x65d   :  { %590 = vrot.lane.b32.xlu1 %v586_v48, %s912_s6 }
 0x65e   :  { %592 = vrot.lane.b32.xlu0 %v587_v49, %s912_s6 }
 0x662   :  { %612 = vperm.xlu0 %863, %v609_v50  }
 0x6cf   :  { %v591_v51 = vpop.permute.xlu1 %590 }
 0x6d0   :  { %v596_v52 = vadd.f32 %v591_v51, %v1067_v62  ;;  %v593_v53 = vpop.permute.xlu0 %592  ;;  %v615_v62 = vlaneseq }
 0x6d1   :  { %v597_v54 = vadd.f32 %v1065_v61, %v593_v53  ;;  %v608_v61 = vld [vmem:[%s1147_s9] sm:$0x1] }
 0x6d2   :  { %v616_v0 = vshrl.u32 %v615_v62, 7 }
 0x6d3   :  { %v870_v55 = vpack.i.bf16 %v597_v54, %v596_v52 }
 0x6d4   :  { %v617_v1 = vsub.s32 0, %v616_v0 }
 0x6d5   :  { %871 = vrot.lane.b32.xlu1 %v870_v55, %s913_s8 }
 0x6e1   :  { %v613_v2 = vpop.permute.xlu0 %612 }
 0x6e2   :  { %v618_v3 = vrot.slane %v613_v2, %v617_v1 }
 0x747   :  { %v872_v56 = vpop.permute.xlu1 %871 }
 0x748   :  { %v874_v57 = vunpack.i.h.bf16 %v872_v56  ;;  %v873_v58 = vunpack.i.l.bf16 %v872_v56 }
 0x74a   :  { %v607_v59 = vsel %vm462_vm5, %v1094_v14, %v874_v57  ;;  %v606_v60 = vsel %vm462_vm5, %v1090_v13, %v873_v58 }
 0x74b   :  { %v852_v63 = vpack.c.bf16 %v607_v59, %v606_v60 }
 0x74d   :  { %854 = vmatpush3.bf16.xpose.msk.msra.mxu0 %vm853_vm7, %v852_v63 }
 0x754   :  { %818 = vmatmul.mubr.msk.f32.vlgmr.msra.gmra.mrb[6].mxu0 %vm619_vm6, %v608_v61 }
 0x827   :  { %v695_v4 = vpop.f32.mrb[6].mxu0 }
 0x828   :  { %v696_v5 = vadd.f32 %v695_v4, %v618_v3  ;;  %v819_v6 = vpop.f32.mrb[7].mxu0 }
 0x82a   :  { %700 = vst.msk [vmem:[#allocation3] sm:$0x1] %vm699_vm8, %v696_v5 }
 0x82b   :  { %894 = shalt.err (!%p891_p4)
}
 0x82c   :  { %s895_s10 = scalar_lea.hbm %s1149_s11, 16 }
 0x82d   :  { %p896_p5 = scmp.ne.s32.totalorder %s1149_s11, %s895_s10  ;;  %p899_p6 = scmp.lt.u32.totalorder %s895_s10, %s1149_s11 }
 0x82f   :  { %p901_p7 = pnand %p899_p6, %p896_p5 }
 0x831   :  { %904 = shalt.err (!%p901_p7)
}
 0x832   :  { %710 = dma.vmem_to_hbm [thread:$0]  %s708_s22, 16, %s1149_s11, [#allocation4]  }
 0x833   :  { %905 = dma.done.wait [#allocation4], 16  }
 0x834   :  { %906 = vsyncadd [#allocation4], 4294967280 }
 0x835   :  { %714 = vsyncpa [#allocation4], 1 }

</bundles_post_ra>
